<compile_context>
chip_gen: v7x
topology: tpu7x:2x2x1
jax: 0.10.0
libtpu: 0.0.40
codegen_flags: <defaults>
</compile_context>

<pallas_src>
import functools

import jax
import jax.numpy as jnp
from jax.experimental import pallas as pl
from jax.experimental.pallas import tpu as pltpu

NUM_KEYPOINTS = 478


def _make_face_mesh_kernel(image_cols, image_rows):
    """Build the kernel with image dims baked in as compile-time constants."""
    w = float(image_cols)
    h = float(image_rows)

    def kernel(lm_ref, out_ref):
        # lm_ref:  (2, TB, 478) f32  -- plane 0 = normalized x, plane 1 = normalized y
        # out_ref: (2, TB, 478) i32  -- pixel coords, sentinel -1 where invalid
        x = lm_ref[0]
        y = lm_ref[1]
        valid = (x >= 0.0) & (x <= 1.0) & (y >= 0.0) & (y <= 1.0)

        xp = jnp.minimum(x * w, w - 1.0)            # min(x*W, W-1)
        yp = jnp.minimum(y * h, h - 1.0)            # min(y*H, H-1)

        # Valid values are >= 0 after the range check, so the truncating int32
        # cast equals floor; invalid lanes carry the exact sentinel -1.0.
        xp = jnp.where(valid, xp, -1.0)
        yp = jnp.where(valid, yp, -1.0)

        out_ref[0] = xp.astype(jnp.int32)
        out_ref[1] = yp.astype(jnp.int32)

    return kernel


def _pick_block_sets(batch, max_block_sets):
    """Largest per-step landmark-set count that divides batch and tiles legally."""
    if batch <= max_block_sets:
        return batch                               # full-extent dim is always legal
    tb = max_block_sets - (max_block_sets % 8)     # second-minor block dim: multiple of 8
    while tb >= 8 and batch % tb != 0:
        tb -= 8
    return tb if tb >= 8 else batch


@functools.partial(jax.jit, static_argnums=(1, 2, 3))
def face_mesh_forward(landmarks_norm, image_rows, image_cols, max_block_sets=512):
    """
    landmarks_norm: (2, B, NUM_KEYPOINTS) float32, coordinate-major
                    (plane 0 = normalized x, plane 1 = normalized y); stands in
                    for the mediapipe face_mesh.process landmark output.
    image_rows, image_cols: Python ints (static image H, W).
    max_block_sets: max landmark sets processed per grid step (static).

    Returns (coordinate-major, no host-side pads / transposes):
      coords: (2, B, NUM_KEYPOINTS) int32 -- plane 0 = x_px, plane 1 = y_px,
              invalid landmarks -> (0, 0).
      valid:  (B, NUM_KEYPOINTS) bool validity mask.
    """
    # TODO(synk): mediapipe FaceMesh inference (the landmark detector itself)
    # has no Pallas equivalent; normalized landmarks are taken as an input.
    # TODO(synk): if image sizes vary at runtime, feed (H, W) as SMEM scalars
    # instead of static args to avoid per-size recompiles.
    _, B, N = landmarks_norm.shape
    assert N == NUM_KEYPOINTS
    lm = landmarks_norm.astype(jnp.float32)

    tb = _pick_block_sets(B, max_block_sets)
    grid = (B // tb,)

    out = pl.pallas_call(
        _make_face_mesh_kernel(image_cols, image_rows),
        out_shape=jax.ShapeDtypeStruct((2, B, N), jnp.int32),
        grid=grid,
        in_specs=[pl.BlockSpec((2, tb, N), lambda b: (0, b, 0))],
        out_specs=pl.BlockSpec((2, tb, N), lambda b: (0, b, 0)),
        compiler_params=pltpu.CompilerParams(
            dimension_semantics=("parallel",)      # shards blocks over 2 TCs on v7x
        ),
    )(lm)

    valid = out[0] >= 0                            # sentinel decode (tiny fused op)
    coords = jnp.where(valid[None], out, 0)        # invalid -> (0, 0)
    return coords, valid


if __name__ == "__main__":
    import numpy as np

    key = jax.random.PRNGKey(0)
    B = 16
    H, W = 24, 16  # image_rows, image_cols (static, baked into the kernel)

    # Synthetic "mediapipe" landmarks, coordinate-major (2, B, 478); mostly in
    # [0, 1] with a few slightly outside to exercise the validity check.
    landmarks = jax.random.uniform(
        key, (2, B, NUM_KEYPOINTS), minval=-0.05, maxval=1.05, dtype=jnp.float32
    )

    # Reference in plain numpy (float32 math to match on-device arithmetic).
    lm = np.asarray(landmarks, np.float32)
    x, y = lm[0], lm[1]
    fw, fh = np.float32(W), np.float32(H)
    ref_valid = (x >= 0) & (x <= 1) & (y >= 0) & (y <= 1)
    ref_x = np.where(ref_valid, np.minimum(np.floor(x * fw), fw - 1), 0.0)
    ref_y = np.where(ref_valid, np.minimum(np.floor(y * fh), fh - 1), 0.0)
    ref = np.stack([ref_x, ref_y], axis=0).astype(np.int32)       # (2, B, 478)

    # 1) Single-block path: whole batch per grid step (grid=(1,)).
    coords, valid = face_mesh_forward(landmarks, H, W, 512)
    coords = jax.block_until_ready(coords)
    valid = jax.block_until_ready(valid)
    assert np.array_equal(np.asarray(valid), ref_valid)
    assert np.array_equal(np.asarray(coords), ref)

    # 2) Multi-step grid path: 8 sets per step (grid=(2,)), exercises the
    #    batched BlockSpec indexing and the parallel dimension semantics.
    coords2, valid2 = face_mesh_forward(landmarks, H, W, 8)
    coords2 = jax.block_until_ready(coords2)
    valid2 = jax.block_until_ready(valid2)
    assert np.array_equal(np.asarray(valid2), ref_valid)
    assert np.array_equal(np.asarray(coords2), ref)

    print("KERNEL_OK")
</pallas_src>

<mosaic_0001>
module attributes {stable_mosaic.version = 11 : i64} {
  func.func @kernel(%arg0: i32, %arg1: memref<2x16x478xf32, #tpu.memory_space<vmem>>, %arg2: memref<2x16x478xi32, #tpu.memory_space<vmem>>) attributes {dimension_semantics = [#tpu.dimension_semantics<parallel>], iteration_bounds = array<i64: 1>, scalar_prefetch = 0 : i64, scratch_operands = 0 : i64, tpu.core_type = #tpu.core_type<tc>, window_params = [{transform_indices = @transform_0, window_bounds = array<i64: 2, 16, 478>}, {transform_indices = @transform_1, window_bounds = array<i64: 2, 16, 478>}]} {
    %c0 = arith.constant 0 : index
    %c0_0 = arith.constant 0 : index
    %c0_1 = arith.constant 0 : index
    %0 = vector.load %arg1[%c0, %c0_0, %c0_1] : memref<2x16x478xf32, #tpu.memory_space<vmem>>, vector<1x16x478xf32>
    %1 = vector.shape_cast %0 : vector<1x16x478xf32> to vector<16x478xf32>
    %c1 = arith.constant 1 : index
    %c0_2 = arith.constant 0 : index
    %c0_3 = arith.constant 0 : index
    %2 = vector.load %arg1[%c1, %c0_2, %c0_3] : memref<2x16x478xf32, #tpu.memory_space<vmem>>, vector<1x16x478xf32>
    %3 = vector.shape_cast %2 : vector<1x16x478xf32> to vector<16x478xf32>
    %cst = arith.constant 0.000000e+00 : f32
    %4 = vector.broadcast %cst : f32 to vector<16x478xf32>
    %5 = arith.cmpf oge, %1, %4 : vector<16x478xf32>
    %cst_4 = arith.constant 1.000000e+00 : f32
    %6 = vector.broadcast %cst_4 : f32 to vector<16x478xf32>
    %7 = arith.cmpf ole, %1, %6 : vector<16x478xf32>
    %8 = arith.andi %5, %7 : vector<16x478xi1>
    %cst_5 = arith.constant 0.000000e+00 : f32
    %9 = vector.broadcast %cst_5 : f32 to vector<16x478xf32>
    %10 = arith.cmpf oge, %3, %9 : vector<16x478xf32>
    %11 = arith.andi %8, %10 : vector<16x478xi1>
    %cst_6 = arith.constant 1.000000e+00 : f32
    %12 = vector.broadcast %cst_6 : f32 to vector<16x478xf32>
    %13 = arith.cmpf ole, %3, %12 : vector<16x478xf32>
    %14 = arith.andi %11, %13 : vector<16x478xi1>
    %cst_7 = arith.constant 1.600000e+01 : f32
    %15 = vector.broadcast %cst_7 : f32 to vector<16x478xf32>
    %16 = arith.mulf %1, %15 : vector<16x478xf32>
    %cst_8 = arith.constant 1.500000e+01 : f32
    %17 = vector.broadcast %cst_8 : f32 to vector<16x478xf32>
    %18 = arith.minimumf %16, %17 : vector<16x478xf32>
    %cst_9 = arith.constant 2.400000e+01 : f32
    %19 = vector.broadcast %cst_9 : f32 to vector<16x478xf32>
    %20 = arith.mulf %3, %19 : vector<16x478xf32>
    %cst_10 = arith.constant 2.300000e+01 : f32
    %21 = vector.broadcast %cst_10 : f32 to vector<16x478xf32>
    %22 = arith.minimumf %20, %21 : vector<16x478xf32>
    %cst_11 = arith.constant -1.000000e+00 : f32
    %23 = vector.broadcast %cst_11 : f32 to vector<16x478xf32>
    %24 = arith.select %14, %18, %23 : vector<16x478xi1>, vector<16x478xf32>
    %cst_12 = arith.constant -1.000000e+00 : f32
    %25 = vector.broadcast %cst_12 : f32 to vector<16x478xf32>
    %26 = arith.select %14, %22, %25 : vector<16x478xi1>, vector<16x478xf32>
    %27 = arith.fptosi %24 : vector<16x478xf32> to vector<16x478xi32>
    %c0_13 = arith.constant 0 : index
    %c0_14 = arith.constant 0 : index
    %c0_15 = arith.constant 0 : index
    %28 = vector.load %arg2[%c0_13, %c0_14, %c0_15] : memref<2x16x478xi32, #tpu.memory_space<vmem>>, vector<1x16x478xi32>
    %29 = vector.shape_cast %28 : vector<1x16x478xi32> to vector<16x478xi32>
    %30 = vector.shape_cast %27 : vector<16x478xi32> to vector<1x16x478xi32>
    tpu.vector_store %arg2[%c0_13, %c0_14, %c0_15], %30 {strides = array<i32>} : memref<2x16x478xi32, #tpu.memory_space<vmem>>, vector<1x16x478xi32>,
    %31 = arith.fptosi %26 : vector<16x478xf32> to vector<16x478xi32>
    %c1_16 = arith.constant 1 : index
    %c0_17 = arith.constant 0 : index
    %c0_18 = arith.constant 0 : index
    %32 = vector.load %arg2[%c1_16, %c0_17, %c0_18] : memref<2x16x478xi32, #tpu.memory_space<vmem>>, vector<1x16x478xi32>
    %33 = vector.shape_cast %32 : vector<1x16x478xi32> to vector<16x478xi32>
    %34 = vector.shape_cast %31 : vector<16x478xi32> to vector<1x16x478xi32>
    tpu.vector_store %arg2[%c1_16, %c0_17, %c0_18], %34 {strides = array<i32>} : memref<2x16x478xi32, #tpu.memory_space<vmem>>, vector<1x16x478xi32>,
    return
  }
  func.func @transform_0(%arg0: i32) -> (i32, i32, i32) {
    %c0_i32 = arith.constant 0 : i32
    %c0_i32_0 = arith.constant 0 : i32
    %c0_i32_1 = arith.constant 0 : i32
    return %c0_i32, %arg0, %c0_i32_0 : i32, i32, i32
  }
  func.func @transform_1(%arg0: i32) -> (i32, i32, i32) {
    %c0_i32 = arith.constant 0 : i32
    %c0_i32_0 = arith.constant 0 : i32
    %c0_i32_1 = arith.constant 0 : i32
    return %c0_i32, %arg0, %c0_i32_0 : i32, i32, i32
  }
}

</mosaic_0001>

<bundles_post_ra>
// kernel: face_mesh_forward.1
= control target key start
LH: loop header
LB: loop body
LE: loop exit
PB: predicated region body
PF: predicated region fallthrough
CT: control target
= control target key end

     0   :  { %6 = vsyncpa [#allocation3], 0  ;;  %s249_s6 = smov [#allocation2]   ;;  %s491_s0 = inlined_call_operand.hbm [shape: f32[2,16,478], index: 0, kind: input, shape index: {}]   ;;  %s492_s1 = inlined_call_operand.vmem [shape: s32[2,16,478], index: 1, kind: output, shape index: {}]  }
   0x1   :  { %s12_s7 = sshll.u32 %s249_s6, 4  ;;  %s225_s10 = scalar_lea.hbm %s491_s0, 2048  ;;  %s13_s7 = int_to_ptr.vmem [resolvable:$true] %s12_s7 }
   0x2   :  { %p226_p0 = scmp.ne.s32.totalorder %s491_s0, %s225_s10  ;;  %p229_p1 = scmp.lt.u32.totalorder %s225_s10, %s491_s0 }
   0x4   :  { %p231_p2 = pnand %p229_p1, %p226_p0 }
   0x6   :  { %234 = shalt.err (!%p231_p2)
}
   0x7   :  { %s235_s15 = scalar_lea.vmem %s13_s7, 2048  ;;  %p240_p4 = scmp.lt.s32.totalorder %s13_s7, %s13_s7 }
   0x8   :  { %p236_p3 = scmp.ne.s32.totalorder %s13_s7, %s235_s15  ;;  %p241_p5 = scmp.lt.s32.totalorder %s235_s15, %s235_s15 }
   0xa   :  { %p242_p6 = por %p241_p5, %p240_p4 }
   0xc   :  { %p243_p7 = pnand %p242_p6, %p236_p3 }
   0xe   :  { %246 = shalt.err (!%p243_p7)
}
   0xf   :  { %s250_s16 = smov 512   ;;  %s251_s17 = smov 32  }
  0x10   :  { %18 = dma.hbm_to_vmem [thread:$0]  %s491_s0, 2048, %s13_s7, [#allocation3], %s250_s16, %s250_s16, %s251_s17  }
  0x11   :  { %247 = dma.done.wait [#allocation3], 2048  }
  0x12   :  { %248 = vsyncadd [#allocation3], 4294965248  ;;  %v22_v0 = vld [vmem:[#allocation2] sm:$0xff]  ;;  %v23_v2 = vld [vmem:[#allocation2 + $0x8] sm:$0xff] }
  0x13   :  { %v274_v1 = vld [vmem:[#allocation2 + $0x40] sm:$0xff]  ;;  %vm39_vm0 = vcmp.ge.f32.partialorder %v22_v0, 0.0  ;;  %vm47_vm1 = vcmp.le.f32.partialorder %v22_v0, 1.0  ;;  %v278_v3 = vld [vmem:[#allocation2 + $0x48] sm:$0xff]  ;;  %v24_v4 = vld [vmem:[#allocation2 + $0x10] sm:$0xff]  ;;  %v95_v5 = vmul.f32 16.0, %v22_v0 }
  0x14   :  { %vm63_vm2 = vcmp.ge.f32.partialorder %v274_v1, 0.0  ;;  %vm79_vm3 = vcmp.le.f32.partialorder %v274_v1, 1.0  ;;  %vm55_vm4 = vmand %vm39_vm0, %vm47_vm1  ;;  %vm40_vm5 = vcmp.ge.f32.partialorder %v23_v2, 0.0  ;;  %vm48_vm6 = vcmp.le.f32.partialorder %v23_v2, 1.0  ;;  %v281_v6 = vld [vmem:[#allocation2 + $0x50] sm:$0xff]  ;;  %v25_v7 = vld [vmem:[#allocation2 + $0x18] sm:$0xff] }
  0x15   :  { %vm64_vm7 = vcmp.ge.f32.partialorder %v278_v3, 0.0  ;;  %vm71_vm8 = vmand %vm55_vm4, %vm63_vm2  ;;  %vm80_vm9 = vcmp.le.f32.partialorder %v278_v3, 1.0  ;;  %v96_v8 = vmul.f32 16.0, %v23_v2  ;;  %vm41_vm10 = vcmp.ge.f32.partialorder %v24_v4, 0.0  ;;  %v284_v9 = vld [vmem:[#allocation2 + $0x58] sm:$0xff]  ;;  %v26_v13 = vld [vmem:[#allocation2 + $0x20] sm:$0xff] }
  0x16   :  { %vm49_vm11 = vcmp.le.f32.partialorder %v24_v4, 1.0  ;;  %vm288_vm12 = vmand %vm71_vm8, %vm79_vm3  ;;  %v103_v11 = vmin.f32 %v95_v5, 15.0  ;;  %vm65_vm13 = vcmp.ge.f32.partialorder %v281_v6, 0.0  ;;  %vm81_vm14 = vcmp.le.f32.partialorder %v281_v6, 1.0  ;;  %v294_v14 = vld [vmem:[#allocation2 + $0x60] sm:$0xff]  ;;  %v27_v19 = vld [vmem:[#allocation2 + $0x28] sm:$0xff] }
  0x17   :  { %v97_v12 = vmul.f32 16.0, %v24_v4  ;;  %vm56_vm15 = vmand %vm40_vm5, %vm48_vm6  ;;  %v104_v15 = vmin.f32 %v96_v8, 15.0  ;;  %vm42_vm0 = vcmp.ge.f32.partialorder %v25_v7, 0.0  ;;  %vm50_vm1 = vcmp.le.f32.partialorder %v25_v7, 1.0  ;;  %v311_v22 = vld [vmem:[#allocation2 + $0x68] sm:$0xff]  ;;  %v318_v26 = vld [vmem:[#allocation2 + $0x30] sm:$0xff] }
  0x18   :  { %v127_v16 = vsel %vm288_vm12, %v103_v11, -1.0  ;;  %vm72_vm3 = vmand %vm56_vm15, %vm64_vm7  ;;  %v98_v18 = vmul.f32 16.0, %v25_v7  ;;  %vm51_vm8 = vcmp.le.f32.partialorder %v26_v13, 1.0  ;;  %vm83_vm4 = vcmp.le.f32.partialorder %v294_v14, 1.0  ;;  %v322_v29 = vld [vmem:[#allocation2 + $0x70] sm:$0xff]  ;;  %v332_v33 = vld [vmem:[#allocation2 + $0x38] sm:$0xff] }
  0x19   :  { %v105_v17 = vmin.f32 %v97_v12, 15.0  ;;  %v190_v20 = vtrunc.f32 %v127_v16  ;;  %vm306_vm5 = vmand %vm72_vm3, %vm80_vm9  ;;  %v99_v25 = vmul.f32 16.0, %v26_v13  ;;  %vm52_vm2 = vcmp.le.f32.partialorder %v27_v19, 1.0  ;;  %v334_v34 = vld [vmem:[#allocation2 + $0x78] sm:$0xff] }
  0x1a   :  { %v128_v23 = vsel %vm306_vm5, %v104_v15, -1.0  ;;  %vm57_vm7 = vmand %vm41_vm10, %vm49_vm11  ;;  %v106_v24 = vmin.f32 %v98_v18, 15.0  ;;  %v100_v32 = vmul.f32 16.0, %v27_v19  ;;  %vm500_vm3 = vcmp.le.f32.partialorder %v284_v9, 1.0 }
  0x1b   :  { %v191_v27 = vcvt.f32.s32 %v190_v20  ;;  %v192_v28 = vtrunc.f32 %v128_v23  ;;  %vm73_vm9 = vmand %vm57_vm7, %vm65_vm13  ;;  %v107_v31 = vmin.f32 %v99_v25, 15.0  ;;  %vm53_vm7 = vcmp.le.f32.partialorder %v318_v26, 1.0 }
  0x1c   :  { %vm326_vm6 = vmand %vm73_vm9, %vm81_vm14  ;;  %vm45_vm14 = vcmp.ge.f32.partialorder %v318_v26, 0.0  ;;  %vm499_vm9 = vcmp.ge.f32.partialorder %v284_v9, 0.0  ;;  %v108_v38 = vmin.f32 %v100_v32, 15.0  ;;  %v101_v40 = vmul.f32 16.0, %v318_v26 }
  0x1d   :  { %151 = vst [vmem:[%s492_s1] sm:$0xff] %v191_v27  ;;  %v193_v35 = vcvt.f32.s32 %v192_v28  ;;  %v129_v36 = vsel %vm326_vm6, %v105_v17, -1.0  ;;  %vm58_vm13 = vmand %vm42_vm0, %vm50_vm1  ;;  %vm503_vm10 = vcmp.ge.f32.partialorder %v26_v13, 0.0  ;;  %v368_v43 = vmul.f32 16.0, %v332_v33 }
  0x1e   :  { %v194_v37 = vtrunc.f32 %v129_v36  ;;  %vm74_vm11 = vmand %vm58_vm13, %vm499_vm9  ;;  %vm54_vm13 = vcmp.le.f32.partialorder %v332_v33, 1.0  ;;  %v109_v45 = vmin.f32 %v101_v40, 15.0  ;;  %v111_v46 = vmul.f32 24.0, %v274_v1 }
  0x1f   :  { %152 = vst [vmem:[%s492_s1 + $0x8] sm:$0xff] %v193_v35  ;;  %vm354_vm0 = vmand %vm74_vm11, %vm500_vm3  ;;  %vm504_vm11 = vcmp.ge.f32.partialorder %v294_v14, 0.0  ;;  %v112_v47 = vmul.f32 24.0, %v278_v3  ;;  %v110_v49 = vmin.f32 %v368_v43, 15.0  ;;  %v113_v50 = vmul.f32 24.0, %v281_v6 }
  0x20   :  { %v195_v41 = vcvt.f32.s32 %v194_v37  ;;  %v130_v42 = vsel %vm354_vm0, %v106_v24, -1.0  ;;  %vm59_vm15 = vmand %vm503_vm10, %vm51_vm8  ;;  %v114_v51 = vmul.f32 24.0, %v284_v9  ;;  %v115_v52 = vmul.f32 24.0, %v294_v14 }
  0x21   :  { %v196_v44 = vtrunc.f32 %v130_v42  ;;  %vm75_vm1 = vmand %vm59_vm15, %vm504_vm11  ;;  %vm507_vm15 = vcmp.ge.f32.partialorder %v27_v19, 0.0  ;;  %v119_v55 = vmin.f32 %v111_v46, 23.0  ;;  %v120_v56 = vmin.f32 %v112_v47, 23.0 }
  0x22   :  { %153 = vst [vmem:[%s492_s1 + $0x10] sm:$0xff] %v195_v41  ;;  %vm379_vm8 = vmand %vm75_vm1, %vm83_vm4  ;;  %vm508_vm4 = vcmp.ge.f32.partialorder %v311_v22, 0.0  ;;  %v121_v58 = vmin.f32 %v113_v50, 23.0  ;;  %v122_v59 = vmin.f32 %v114_v51, 23.0  ;;  %v123_v60 = vmin.f32 %v115_v52, 23.0 }
  0x23   :  { %v197_v53 = vcvt.f32.s32 %v196_v44  ;;  %v131_v54 = vsel %vm379_vm8, %v107_v31, -1.0  ;;  %vm60_vm10 = vmand %vm507_vm15, %vm52_vm2  ;;  %vm509_vm11 = vcmask 769024   ;;  %vm510_vm3 = vcmp.le.f32.partialorder %v311_v22, 1.0 }
  0x24   :  { %v198_v57 = vtrunc.f32 %v131_v54  ;;  %vm76_vm1 = vmand %vm60_vm10, %vm508_vm4  ;;  %v135_v62 = vsel %vm288_vm12, %v119_v55, -1.0  ;;  %v136_v63 = vsel %vm306_vm5, %v120_v56, -1.0  ;;  %v116_v0 = vmul.f32 24.0, %v311_v22 }
  0x25   :  { %155 = vst.msk [vmem:[%s492_s1 + $0x18] sm:$0xff] %vm509_vm11, %v197_v53  ;;  %vm399_vm9 = vmand %vm76_vm1, %vm510_vm3  ;;  %v117_v1 = vmul.f32 24.0, %v322_v29  ;;  %v206_v4 = vtrunc.f32 %v135_v62  ;;  %v208_v5 = vtrunc.f32 %v136_v63  ;;  %vm513_vm12 = vcmp.ge.f32.partialorder %v322_v29, 0.0 }
  0x26   :  { %v199_v2 = vcvt.f32.s32 %v198_v57  ;;  %v132_v3 = vsel %vm399_vm9, %v108_v38, -1.0  ;;  %vm61_vm2 = vmand %vm45_vm14, %vm53_vm7  ;;  %v137_v7 = vsel %vm326_vm6, %v121_v58, -1.0  ;;  %v138_v8 = vsel %vm354_vm0, %v122_v59, -1.0 }
  0x27   :  { %v200_v6 = vtrunc.f32 %v132_v3  ;;  %vm77_vm3 = vmand %vm61_vm2, %vm513_vm12  ;;  %v139_v9 = vsel %vm379_vm8, %v123_v60, -1.0  ;;  %vm514_vm5 = vcmp.le.f32.partialorder %v322_v29, 1.0  ;;  %v207_v11 = vcvt.f32.s32 %v206_v4 }
  0x28   :  { %156 = vst [vmem:[%s492_s1 + $0x20] sm:$0xff] %v199_v2  ;;  %vm428_vm14 = vmand %vm77_vm3, %vm514_vm5  ;;  %v209_v12 = vcvt.f32.s32 %v208_v5  ;;  %v210_v13 = vtrunc.f32 %v137_v7  ;;  %v212_v14 = vtrunc.f32 %v138_v8  ;;  %vm517_vm6 = vcmp.ge.f32.partialorder %v332_v33, 0.0 }
  0x29   :  { %v201_v15 = vcvt.f32.s32 %v200_v6  ;;  %v133_v16 = vsel %vm428_vm14, %v109_v45, -1.0  ;;  %vm62_vm7 = vmand %vm517_vm6, %vm54_vm13  ;;  %v214_v17 = vtrunc.f32 %v139_v9  ;;  %v124_v18 = vmin.f32 %v116_v0, 23.0  ;;  %182 = vst [vmem:[%s492_s1 + $0x40] sm:$0xff] %v207_v11 }
  0x2a   :  { %v202_v19 = vtrunc.f32 %v133_v16  ;;  %vm518_vm0 = vcmp.ge.f32.partialorder %v334_v34, 0.0  ;;  %183 = vst [vmem:[%s492_s1 + $0x48] sm:$0xff] %v209_v12  ;;  %v211_v20 = vcvt.f32.s32 %v210_v13  ;;  %v213_v21 = vcvt.f32.s32 %v212_v14  ;;  %vm522_vm10 = vmmov %vm509_vm11 }
  0x2b   :  { %vm78_vm8 = vmand %vm62_vm7, %vm518_vm0  ;;  %v125_v22 = vmin.f32 %v117_v1, 23.0  ;;  %157 = vst [vmem:[%s492_s1 + $0x28] sm:$0xff] %v201_v15  ;;  %vm519_vm13 = vcmp.le.f32.partialorder %v334_v34, 1.0  ;;  %v215_v24 = vcvt.f32.s32 %v214_v17  ;;  %v140_v25 = vsel %vm399_vm9, %v124_v18, -1.0 }
  0x2c   :  { %vm451_vm15 = vmand %vm78_vm8, %vm519_vm13  ;;  %v118_v26 = vmul.f32 24.0, %v334_v34  ;;  %v203_v27 = vcvt.f32.s32 %v202_v19  ;;  %184 = vst [vmem:[%s492_s1 + $0x50] sm:$0xff] %v211_v20  ;;  %v216_v29 = vtrunc.f32 %v140_v25 }
  0x2d   :  { %v134_v28 = vsel %vm451_vm15, %v110_v49, -1.0  ;;  %185 = vst.msk [vmem:[%s492_s1 + $0x58] sm:$0xff] %vm522_vm10, %v213_v21  ;;  %v141_v30 = vsel %vm428_vm14, %v125_v22, -1.0  ;;  %186 = vst [vmem:[%s492_s1 + $0x60] sm:$0xff] %v215_v24 }
  0x2e   :  { %v204_v31 = vtrunc.f32 %v134_v28  ;;  %v218_v32 = vtrunc.f32 %v141_v30  ;;  %v126_v33 = vmin.f32 %v118_v26, 23.0  ;;  %158 = vst [vmem:[%s492_s1 + $0x30] sm:$0xff] %v203_v27  ;;  %v217_v34 = vcvt.f32.s32 %v216_v29  ;;  %vm523_vm9 = vmmov %vm522_vm10 }
  0x2f   :  { %vm524_vm4 = vmmov %vm523_vm9 }
  0x30   :  { %v205_v35 = vcvt.f32.s32 %v204_v31  ;;  %v219_v36 = vcvt.f32.s32 %v218_v32  ;;  %v142_v37 = vsel %vm451_vm15, %v126_v33, -1.0  ;;  %187 = vst [vmem:[%s492_s1 + $0x68] sm:$0xff] %v217_v34 }
  0x31   :  { %v220_v38 = vtrunc.f32 %v142_v37 }
  0x32   :  { %159 = vst.msk [vmem:[%s492_s1 + $0x38] sm:$0xff] %vm523_vm9, %v205_v35  ;;  %188 = vst [vmem:[%s492_s1 + $0x70] sm:$0xff] %v219_v36 }
  0x33   :  { %v221_v39 = vcvt.f32.s32 %v220_v38 }
  0x35   :  { %189 = vst.msk [vmem:[%s492_s1 + $0x78] sm:$0xff] %vm524_vm4, %v221_v39 }
  0x36   :  { %181 = vsyncpa [#allocation3], 1 }

</bundles_post_ra>
